<compile_context>
chip_gen: v6e
topology: v6e:2x2x1
jax: 0.10.0
libtpu: 0.0.40
codegen_flags: <defaults>
</compile_context>

<pallas_src>
import jax
import jax.numpy as jnp
from jax import lax
from jax.experimental import pallas as pl
from jax.experimental.pallas import tpu as pltpu


def mlp_kernel(x_ref, w1_ref, b1_ref, w2_ref, b2_ref, o_ref):
    # fc1 on the MXU, computed transposed:  h_t[j, b] = sum_k w1[j, k] * x[b, k]
    #   w1_ref: (H_pad, 10), x_ref: (TM, 10)  ->  h_t: (H_pad, TM)  (batch is lane-major)
    h_t = lax.dot_general(
        w1_ref[...], x_ref[...],
        dimension_numbers=(((1,), (1,)), ((), ())),
        preferred_element_type=jnp.float32,
    )
    h_t = jnp.maximum(h_t + b1_ref[...], 0.0)       # bias (H_pad,1) broadcasts over lanes; ReLU

    # fc2 off the MXU: VPU multiply + sublane reduce -> already lane-dense (1, TM).
    y = jnp.sum(h_t * w2_ref[...], axis=0, keepdims=True) + b2_ref[0, 0]

    # Sigmoid via a single EUP tanh (no divide, no exp overflow).
    o_ref[...] = (0.5 * (jnp.tanh(0.5 * y) + 1.0)).astype(o_ref.dtype)


def _round_up(n, m):
    return ((n + m - 1) // m) * m


def _choose_tm(batch, tm_max):
    """Pick the batch-row tile (multiple of 128)."""
    if batch <= 1024:
        # Single padded tile for small batches.
        return max(128, _round_up(batch, 128))
    tm = min(tm_max, 4096)  # VMEM-safe (lane-padded x, double/triple buffered) on v5e/v6e/v7x.
    # Keep >= 2 grid steps so dimension_semantics=("parallel",) can split batch over 2 TCs (v7x).
    tm = min(tm, max(128, _round_up(pl.cdiv(batch, 2), 128)))
    return tm


def simple_model_forward(x, w1, b1, w2, b2, *, tm=4096):
    """Forward pass of SimpleModel.

    x : (B, 10) float32
    Params in PyTorch nn.Linear layout:
      w1: (5, 10)  b1: (5,)   -- fc1.weight / fc1.bias
      w2: (1, 5)   b2: (1,)   -- fc2.weight / fc2.bias
    Returns (B, 1) float32.
    """
    B, f_in = x.shape
    h = w1.shape[0]
    h_pad = _round_up(h, 8)               # pad hidden dim to one sublane tile (zeros => exact)

    tm = _choose_tm(B, tm)
    num_tiles = pl.cdiv(B, tm)            # ragged final block handled by Pallas (no x padding)
    b_pad = num_tiles * tm                # output slab width (full, unmasked lane-dense stores)

    # Zero-pad params: extra hidden units have zero in/out weights => contribute nothing.
    w1_p = jnp.pad(w1, ((0, h_pad - h), (0, 0)))                       # (h_pad, f_in)
    b1_p = jnp.pad(b1, (0, h_pad - h)).reshape(h_pad, 1)               # (h_pad, 1)
    w2_p = jnp.pad(w2.reshape(-1), (0, h_pad - h)).reshape(h_pad, 1)   # (h_pad, 1)
    b2_p = b2.reshape(1, 1)                                            # scalar for SMEM

    # Deeper buffering on x only when the grid is long enough for it to matter.
    x_spec_kwargs = {}
    if num_tiles >= 3:
        x_spec_kwargs["pipeline_mode"] = pl.Buffered(3)
    x_spec = pl.BlockSpec((tm, f_in), lambda i: (i, 0), **x_spec_kwargs)

    out_row = pl.pallas_call(
        mlp_kernel,
        out_shape=jax.ShapeDtypeStruct((1, b_pad), jnp.float32),
        grid=(num_tiles,),
        in_specs=[
            x_spec,                                             # x rows for this tile (ragged last)
            pl.BlockSpec((h_pad, f_in), lambda i: (0, 0)),      # w1 (grid-invariant)
            pl.BlockSpec((h_pad, 1), lambda i: (0, 0)),         # b1 column
            pl.BlockSpec((h_pad, 1), lambda i: (0, 0)),         # w2 column
            pl.BlockSpec(memory_space=pltpu.MemorySpace.SMEM),  # b2 scalar in SMEM
        ],
        out_specs=pl.BlockSpec((1, tm), lambda i: (0, i)),      # lane-dense output slab
        compiler_params=pltpu.CompilerParams(
            dimension_semantics=("parallel",),                  # v7x: split batch over 2 TCs
        ),
    )(x, w1_p, b1_p, w2_p, b2_p)

    # Lanes >= B may hold garbage from the ragged last x block; they are discarded here.
    return out_row[0, :B].reshape(B, 1)


def init_params(key):
    # Deterministic init mimicking nn.Linear (PyTorch layout):
    #   fc1: weight (5, 10), bias (5,);  fc2: weight (1, 5), bias (1,)
    k1, k2, k3, k4 = jax.random.split(key, 4)
    bound1 = 1.0 / (10.0 ** 0.5)
    bound2 = 1.0 / (5.0 ** 0.5)
    w1 = jax.random.uniform(k1, (5, 10), jnp.float32, -bound1, bound1)
    b1 = jax.random.uniform(k2, (5,), jnp.float32, -bound1, bound1)
    w2 = jax.random.uniform(k3, (1, 5), jnp.float32, -bound2, bound2)
    b2 = jax.random.uniform(k4, (1,), jnp.float32, -bound2, bound2)
    return w1, b1, w2, b2


def _reference(x, w1, b1, w2, b2):
    hidden = jnp.maximum(x @ w1.T + b1, 0.0)
    return jax.nn.sigmoid(hidden @ w2.T + b2)


if __name__ == "__main__":
    key = jax.random.PRNGKey(0)
    k_x, k_p = jax.random.split(key)
    w1, b1, w2, b2 = init_params(k_p)

    # Small demo batch (single partial 128-row tile, no x padding).
    B = 8
    x = jax.random.normal(k_x, (B, 10), jnp.float32)
    out = jax.block_until_ready(simple_model_forward(x, w1, b1, w2, b2))
    ref = _reference(x, w1, b1, w2, b2)
    assert out.shape == (B, 1)
    assert jnp.allclose(out, ref, atol=1e-4, rtol=1e-4), float(jnp.max(jnp.abs(out - ref)))

    # Non-multiple-of-128 batch: single collapsed tile, ragged read, no wrapper pad.
    B2 = 777
    x2 = jax.random.normal(jax.random.PRNGKey(1), (B2, 10), jnp.float32)
    out2 = jax.block_until_ready(simple_model_forward(x2, w1, b1, w2, b2))
    ref2 = _reference(x2, w1, b1, w2, b2)
    assert out2.shape == (B2, 1)
    assert jnp.allclose(out2, ref2, atol=1e-4, rtol=1e-4), float(jnp.max(jnp.abs(out2 - ref2)))

    # Multi-tile batch: exercises the grid pipeline, Buffered(3) x path, and the ragged
    # final block (13000 % 4096 != 0) with no wrapper-side padding copy.
    B3 = 13000
    x3 = jax.random.normal(jax.random.PRNGKey(2), (B3, 10), jnp.float32)
    out3 = jax.block_until_ready(simple_model_forward(x3, w1, b1, w2, b2))
    ref3 = _reference(x3, w1, b1, w2, b2)
    assert out3.shape == (B3, 1)
    assert jnp.allclose(out3, ref3, atol=1e-4, rtol=1e-4), float(jnp.max(jnp.abs(out3 - ref3)))

    print("KERNEL_OK")
</pallas_src>

<mosaic_0001>
module attributes {stable_mosaic.version = 11 : i64} {
  func.func @mlp_kernel(%arg0: i32, %arg1: memref<128x10xf32, #tpu.memory_space<vmem>>, %arg2: memref<8x10xf32, #tpu.memory_space<vmem>>, %arg3: memref<8x1xf32, #tpu.memory_space<vmem>>, %arg4: memref<8x1xf32, #tpu.memory_space<vmem>>, %arg5: memref<1x1xf32, #tpu.memory_space<smem>>, %arg6: memref<1x128xf32, #tpu.memory_space<vmem>>) attributes {dimension_semantics = [#tpu.dimension_semantics<parallel>], iteration_bounds = array<i64: 1>, scalar_prefetch = 0 : i64, scratch_operands = 0 : i64, tpu.core_type = #tpu.core_type<tc>, window_params = [{transform_indices = @transform_0, window_bounds = array<i64: 128, 10>}, {pipeline_mode = #tpu.pipeline_mode<synchronous>, transform_indices = @transform_1, window_bounds = array<i64: 8, 10>}, {pipeline_mode = #tpu.pipeline_mode<synchronous>, transform_indices = @transform_2, window_bounds = array<i64: 8, 1>}, {pipeline_mode = #tpu.pipeline_mode<synchronous>, transform_indices = @transform_3, window_bounds = array<i64: 8, 1>}, {transform_indices = @transform_4, window_bounds = array<i64: 1, 1>}, {transform_indices = @transform_5, window_bounds = array<i64: 1, 128>}]} {
    %c0 = arith.constant 0 : index
    %c0_0 = arith.constant 0 : index
    %0 = vector.load %arg2[%c0, %c0_0] : memref<8x10xf32, #tpu.memory_space<vmem>>, vector<8x10xf32>
    %c0_1 = arith.constant 0 : index
    %c0_2 = arith.constant 0 : index
    %1 = vector.load %arg1[%c0_1, %c0_2] : memref<128x10xf32, #tpu.memory_space<vmem>>, vector<128x10xf32>
    %cst = arith.constant dense<0.000000e+00> : vector<8x128xf32>
    %2 = tpu.matmul %0, %1, %cst {dimension_numbers = #tpu.dot_dimension_numbers<[1], [1], [0], [0], [0, 0, 1, 0], [], []>} : vector<8x10xf32>, vector<128x10xf32>, vector<8x128xf32> -> vector<8x128xf32>
    %c0_3 = arith.constant 0 : index
    %c0_4 = arith.constant 0 : index
    %3 = vector.load %arg3[%c0_3, %c0_4] : memref<8x1xf32, #tpu.memory_space<vmem>>, vector<8x1xf32>
    %4 = vector.broadcast %3 : vector<8x1xf32> to vector<8x128xf32>
    %5 = arith.addf %2, %4 : vector<8x128xf32>
    %cst_5 = arith.constant 0.000000e+00 : f32
    %6 = vector.broadcast %cst_5 : f32 to vector<8x128xf32>
    %7 = arith.maximumf %5, %6 : vector<8x128xf32>
    %c0_6 = arith.constant 0 : index
    %c0_7 = arith.constant 0 : index
    %8 = vector.load %arg4[%c0_6, %c0_7] : memref<8x1xf32, #tpu.memory_space<vmem>>, vector<8x1xf32>
    %9 = vector.broadcast %8 : vector<8x1xf32> to vector<8x128xf32>
    %10 = arith.mulf %7, %9 : vector<8x128xf32>
    %cst_8 = arith.constant dense<0.000000e+00> : vector<128xf32>
    %11 = vector.multi_reduction <add>, %10, %cst_8 [0] : vector<8x128xf32> to vector<128xf32>
    %12 = vector.shape_cast %11 : vector<128xf32> to vector<1x128xf32>
    %c0_9 = arith.constant 0 : index
    %c0_10 = arith.constant 0 : index
    %13 = memref.load %arg5[%c0_9, %c0_10] : memref<1x1xf32, #tpu.memory_space<smem>>
    %14 = vector.broadcast %13 : f32 to vector<1x128xf32>
    %15 = arith.addf %12, %14 : vector<1x128xf32>
    %cst_11 = arith.constant 5.000000e-01 : f32
    %16 = vector.broadcast %cst_11 : f32 to vector<1x128xf32>
    %17 = arith.mulf %16, %15 : vector<1x128xf32>
    %18 = math.tanh %17 : vector<1x128xf32>
    %cst_12 = arith.constant 1.000000e+00 : f32
    %19 = vector.broadcast %cst_12 : f32 to vector<1x128xf32>
    %20 = arith.addf %18, %19 : vector<1x128xf32>
    %cst_13 = arith.constant 5.000000e-01 : f32
    %21 = vector.broadcast %cst_13 : f32 to vector<1x128xf32>
    %22 = arith.mulf %21, %20 : vector<1x128xf32>
    %c0_14 = arith.constant 0 : index
    %c0_15 = arith.constant 0 : index
    %23 = vector.load %arg6[%c0_14, %c0_15] : memref<1x128xf32, #tpu.memory_space<vmem>>, vector<1x128xf32>
    tpu.vector_store %arg6[%c0_14, %c0_15], %22 {strides = array<i32>} : memref<1x128xf32, #tpu.memory_space<vmem>>, vector<1x128xf32>,
    return
  }
  func.func @transform_0(%arg0: i32) -> (i32, i32) {
    %c0_i32 = arith.constant 0 : i32
    %c0_i32_0 = arith.constant 0 : i32
    return %arg0, %c0_i32 : i32, i32
  }
  func.func @transform_1(%arg0: i32) -> (i32, i32) {
    %c0_i32 = arith.constant 0 : i32
    %c0_i32_0 = arith.constant 0 : i32
    %c0_i32_1 = arith.constant 0 : i32
    return %c0_i32, %c0_i32_0 : i32, i32
  }
  func.func @transform_2(%arg0: i32) -> (i32, i32) {
    %c0_i32 = arith.constant 0 : i32
    %c0_i32_0 = arith.constant 0 : i32
    %c0_i32_1 = arith.constant 0 : i32
    return %c0_i32, %c0_i32_0 : i32, i32
  }
  func.func @transform_3(%arg0: i32) -> (i32, i32) {
    %c0_i32 = arith.constant 0 : i32
    %c0_i32_0 = arith.constant 0 : i32
    %c0_i32_1 = arith.constant 0 : i32
    return %c0_i32, %c0_i32_0 : i32, i32
  }
  func.func @transform_4(%arg0: i32) -> (i32, i32) {
    %c0_i32 = arith.constant 0 : i32
    %c0_i32_0 = arith.constant 0 : i32
    %c0_i32_1 = arith.constant 0 : i32
    return %c0_i32, %c0_i32_0 : i32, i32
  }
  func.func @transform_5(%arg0: i32) -> (i32, i32) {
    %c0_i32 = arith.constant 0 : i32
    %c0_i32_0 = arith.constant 0 : i32
    return %c0_i32, %arg0 : i32, i32
  }
}

</mosaic_0001>

<bundles_post_ra>
// kernel: tpu_custom_call.1
= control target key start
LH: loop header
LB: loop body
LE: loop exit
PB: predicated region body
PF: predicated region fallthrough
CT: control target
= control target key end

     0   :  { %vm45_vm0 = vcmask 80896   ;;  %v301_v1 = vmov 0.0   ;;  %vm302_vm1 = vmmov 0   ;;  %v303_v2 = vmov 0   ;;  %s415_s0 = inlined_call_operand.vmem [shape: f32[8,10], index: 0, kind: input, shape index: {}]   ;;  %s416_s1 = inlined_call_operand.vmem [shape: f32[8,10], index: 1, kind: input, shape index: {}]   ;;  %s417_s2 = inlined_call_operand.vmem [shape: f32[8,1], index: 2, kind: input, shape index: {}]   ;;  %s418_s3 = inlined_call_operand.vmem [shape: f32[8,1], index: 3, kind: input, shape index: {}]   ;;  %s419_s4 = inlined_call_operand.<no memory space> [shape: f32[1,1], index: 4, kind: input, shape index: {}]   ;;  %s420_s5 = inlined_call_operand.hbm [shape: f32[1,128], index: 5, kind: output, shape index: {}]  }
   0x1   :  { %v38_v0 = vld [vmem:[%s415_s0 + $0x78] sm:$0xff]  ;;  %237 = vmatprep.subr.mxu0 %v301_v1  ;;  %269 = vmatprep.mubr.msk.f32.mxu0 %vm302_vm1, %v301_v1  ;;  %v37_v3 = vld [vmem:[%s415_s0 + $0x70] sm:$0xff]  ;;  %v39_v4 = vld [vmem:[%s417_s2] sm:$0xff] }
   0x2   :  { %238 = vmatpush3.xpose.msk.msra.mxu0 %vm45_vm0, %v38_v0  ;;  %276 = vset.pattern.permute.xlu0 %v303_v2 }
   0x3   :  { %239 = vmatprep.subr.mxu0 %v301_v1  ;;  %42 = vperm.xlu0 %276, %v39_v4  }
   0x6   :  { %240 = vmatpush3.xpose.msk.msra.mxu0 %vm45_vm0, %v37_v3 }
   0x7   :  { %11 = vsyncpa [#allocation4], 0  ;;  %241 = vmatprep.subr.mxu0 %v301_v1  ;;  %v36_v5 = vld [vmem:[%s415_s0 + $0x68] sm:$0xff]  ;;  %v168_v6 = vld [vmem:[%s418_s3] sm:$0xff]  ;;  %v182_v33 = vstv %s419_s4 }
   0x8   :  { %171 = vperm.xlu0 %276, %v168_v6   ;;  %v35_v7 = vld [vmem:[%s415_s0 + $0x60] sm:$0xff]  ;;  %v34_v8 = vld [vmem:[%s415_s0 + $0x58] sm:$0xff]  ;;  %v33_v9 = vld [vmem:[%s415_s0 + $0x50] sm:$0xff] }
   0x9   :  { %v32_v10 = vld [vmem:[%s415_s0 + $0x48] sm:$0xff]  ;;  %v31_v11 = vld [vmem:[%s415_s0 + $0x40] sm:$0xff]  ;;  %v30_v12 = vld [vmem:[%s415_s0 + $0x38] sm:$0xff] }
   0xa   :  { %242 = vmatpush3.xpose.msk.msra.mxu0 %vm45_vm0, %v36_v5  ;;  %v29_v13 = vld [vmem:[%s415_s0 + $0x30] sm:$0xff]  ;;  %v28_v14 = vld [vmem:[%s415_s0 + $0x28] sm:$0xff]  ;;  %v27_v15 = vld [vmem:[%s415_s0 + $0x20] sm:$0xff] }
   0xb   :  { %243 = vmatprep.subr.mxu0 %v301_v1  ;;  %v26_v16 = vld [vmem:[%s415_s0 + $0x18] sm:$0xff]  ;;  %v25_v17 = vld [vmem:[%s415_s0 + $0x10] sm:$0xff]  ;;  %v24_v18 = vld [vmem:[%s415_s0 + $0x8] sm:$0xff] }
   0xc   :  { %v23_v19 = vld [vmem:[%s415_s0] sm:$0xff] }
   0xd   :  { %v22_v20 = vld [vmem:[%s416_s1] sm:$0xff]  ;;  %s304_s1 = smov [#allocation3]  }
   0xe   :  { %244 = vmatpush3.xpose.msk.msra.mxu0 %vm45_vm0, %v35_v7  ;;  %s195_s2 = sshll.u32 %s304_s1, 4  ;;  %s196_s2 = int_to_ptr.vmem [resolvable:$true] %s195_s2 }
   0xf   :  { %245 = vmatprep.subr.mxu0 %v301_v1  ;;  %s279_s30 = scalar_lea.vmem %s196_s2, 16  ;;  %s283_s6 = scalar_lea.vmem %s196_s2, 32 }
  0x10   :  { %p280_p0 = scmp.ne.s32.totalorder %s196_s2, %s279_s30  ;;  %p284_p1 = scmp.lt.s32.totalorder %s196_s2, %s196_s2 }
  0x11   :  { %p285_p2 = scmp.lt.s32.totalorder %s283_s6, %s279_s30 }
  0x12   :  { %246 = vmatpush3.xpose.msk.msra.mxu0 %vm45_vm0, %v34_v8 }
  0x13   :  { %247 = vmatprep.subr.mxu0 %v301_v1  ;;  %p286_p3 = por %p285_p2, %p284_p1 }
  0x15   :  { %p287_p4 = pnand %p286_p3, %p280_p0 }
  0x16   :  { %248 = vmatpush3.xpose.msk.msra.mxu0 %vm45_vm0, %v33_v9 }
  0x17   :  { %249 = vmatprep.subr.mxu0 %v301_v1 }
  0x1a   :  { %250 = vmatpush3.xpose.msk.msra.mxu0 %vm45_vm0, %v32_v10 }
  0x1b   :  { %251 = vmatprep.subr.mxu0 %v301_v1 }
  0x1e   :  { %252 = vmatpush3.xpose.msk.msra.mxu0 %vm45_vm0, %v31_v11 }
  0x1f   :  { %253 = vmatprep.subr.mxu0 %v301_v1 }
  0x22   :  { %254 = vmatpush3.xpose.msk.msra.mxu0 %vm45_vm0, %v30_v12 }
  0x23   :  { %255 = vmatprep.subr.mxu0 %v301_v1 }
  0x26   :  { %256 = vmatpush3.xpose.msk.msra.mxu0 %vm45_vm0, %v29_v13 }
  0x27   :  { %257 = vmatprep.subr.mxu0 %v301_v1 }
  0x2a   :  { %258 = vmatpush3.xpose.msk.msra.mxu0 %vm45_vm0, %v28_v14 }
  0x2b   :  { %259 = vmatprep.subr.mxu0 %v301_v1 }
  0x2e   :  { %260 = vmatpush3.xpose.msk.msra.mxu0 %vm45_vm0, %v27_v15 }
  0x2f   :  { %261 = vmatprep.subr.mxu0 %v301_v1 }
  0x32   :  { %262 = vmatpush3.xpose.msk.msra.mxu0 %vm45_vm0, %v26_v16 }
  0x33   :  { %263 = vmatprep.subr.mxu0 %v301_v1 }
  0x36   :  { %264 = vmatpush3.xpose.msk.msra.mxu0 %vm45_vm0, %v25_v17 }
  0x37   :  { %265 = vmatprep.subr.mxu0 %v301_v1 }
  0x3a   :  { %266 = vmatpush3.xpose.msk.msra.mxu0 %vm45_vm0, %v24_v18 }
  0x3b   :  { %267 = vmatprep.subr.mxu0 %v301_v1 }
  0x3e   :  { %268 = vmatpush3.xpose.msk.msra.mxu0 %vm45_vm0, %v23_v19 }
  0x41   :  { %270 = vmatmul.mubr.msk.f32.vlgmr.msra.gmra.mxu0 %vm45_vm0, %v22_v20 }
  0x7e   :  { %v43_v21 = vpop.permute.xlu0 %42 }
  0x83   :  { %v172_v26 = vpop.permute.xlu0 %171 }
 0x101   :  { %v163_v22 = vpop.f32.mrf.mxu0 }
 0x102   :  { %v164_v23 = vadd.f32 %v163_v22, %v43_v21 }
 0x103   :  { %v271_v24 = vpop.f32.mrf.mxu0 }
 0x104   :  { %v167_v25 = vmax.f32 %v164_v23, 0.0 }
 0x106   :  { %v174_v27 = vmul.f32 %v172_v26, %v167_v25 }
 0x108   :  { %v175_v28 = vrot.slane %v174_v27, 4 }
 0x10a   :  { %v176_v29 = vadd.f32 %v175_v28, %v174_v27 }
 0x10c   :  { %v177_v30 = vrot.slane %v176_v29, 2 }
 0x10e   :  { %v178_v31 = vadd.f32 %v177_v30, %v176_v29 }
 0x110   :  { %v179_v32 = vrot.slane %v178_v31, 1 }
 0x112   :  { %v180_v34 = vadd.f32 %v179_v32, %v178_v31 }
 0x114   :  { %v183_v35 = vadd.f32 %v182_v33, %v180_v34 }
 0x116   :  { %v184_v36 = vmul.f32 0.5, %v183_v35 }
 0x118   :  { %277 = vtanh.f32 %v184_v36 }
 0x125   :  { %v278_v37 = vpop.eup %277 }
 0x126   :  { %v186_v38 = vadd.f32 1.0, %v278_v37 }
 0x128   :  { %v187_v39 = vmul.f32 0.5, %v186_v38 }
 0x12a   :  { %188 = vst [vmem:[#allocation3] sm:$0x1] %v187_v39 }
 0x12b   :  { %290 = shalt.err (!%p287_p4)
}
 0x12c   :  { %198 = dma.vmem_to_hbm [thread:$0]  %s196_s2, 16, %s420_s5, [#allocation4]  }
 0x12d   :  { %299 = dma.done.wait [#allocation4], 16  }
 0x12e   :  { %300 = vsyncadd [#allocation4], 4294967280 }
 0x12f   :  { %202 = vsyncpa [#allocation4], 1 }

</bundles_post_ra>
